<compile_context>
chip_gen: v7x
topology: tpu7x:2x2x1
jax: 0.10.0
libtpu: 0.0.40
codegen_flags: <defaults>
</compile_context>

<pallas_src>
import functools

import jax
import jax.numpy as jnp
from jax.experimental import pallas as pl
from jax.experimental.pallas import tpu as pltpu

LANE = 128     # lane width: feature / class / node dims padded to a multiple of this
SUBLANE = 8    # sublane width: pooled (graph) rows padded to a multiple of this


def _round_up(v, m):
    return (v + m - 1) // m * m


def _pad2d(m, rows, cols):
    r, c = m.shape
    if r == rows and c == cols:
        return m
    return jnp.zeros((rows, cols), m.dtype).at[:r, :c].set(m)


# ----------------------------------------------------------------------------
# Fused Pallas kernel: conv1 + ReLU + conv2 + ReLU + (dropout=id) + conv3 + pool
# ----------------------------------------------------------------------------
def _gcn_fused_kernel(a_ref, x_ref,
                      w1r_ref, w1o_ref, b1_ref,
                      w2r_ref, w2o_ref, b2_ref,
                      w3r_ref, w3o_ref, b3_ref,
                      pa_ref, p_ref, o_ref):
    f32 = jnp.float32
    a = a_ref[...].astype(f32)        # bf16 storage (exact small ints) -> f32 compute
    h = x_ref[...]                    # (Np, f0p) zero-padded node features

    # ---- Layer 1: relu(A@h @ W_rel + h @ W_root + b)  (two dots, no concat copy) ----
    agg = jnp.dot(a, h, preferred_element_type=f32)                       # (Np, f0p)
    h = (jnp.dot(agg, w1r_ref[...], preferred_element_type=f32)
         + jnp.dot(h, w1o_ref[...], preferred_element_type=f32)
         + b1_ref[...])
    h = jnp.maximum(h, 0.0)                                               # (Np, hp)

    # ---- Layer 2 ---------------------------------------------------------------------
    agg = jnp.dot(a, h, preferred_element_type=f32)                       # (Np, hp)
    h = (jnp.dot(agg, w2r_ref[...], preferred_element_type=f32)
         + jnp.dot(h, w2o_ref[...], preferred_element_type=f32)
         + b2_ref[...])
    h = jnp.maximum(h, 0.0)                                               # (Np, hp)

    # ---- Dropout(p=0.5, training=False) == identity ------------------------------------

    # ---- Layer 3 + global_mean_pool folded (no ReLU after conv3, so pool first):
    #      out = (P@A @ h) @ W_rel + (P @ h) @ W_root + b3   -- all matmuls over Gp rows.
    zr = jnp.dot(pa_ref[...], h, preferred_element_type=f32)              # (Gp, hp)
    zo = jnp.dot(p_ref[...], h, preferred_element_type=f32)               # (Gp, hp)
    out = (jnp.dot(zr, w3r_ref[...], preferred_element_type=f32)
           + jnp.dot(zo, w3o_ref[...], preferred_element_type=f32)
           + b3_ref[...])                                                 # (Gp, cp) lane-dense
    o_ref[...] = out.astype(o_ref.dtype)                                  # single unmasked store


# ----------------------------------------------------------------------------
# One-time packing (hoisted out of the per-forward path)
# ----------------------------------------------------------------------------
def pack_params(params, num_features):
    """Pad weights to lane-dense shapes ONCE (exact zero padding)."""
    hid = params["w1_rel"].shape[1]
    ncls = params["w3_rel"].shape[1]
    f0p = _round_up(max(num_features, 1), LANE)
    hp = _round_up(hid, LANE)
    cp = _round_up(ncls, LANE)
    return {
        "w1r": _pad2d(params["w1_rel"], f0p, hp),
        "w1o": _pad2d(params["w1_root"], f0p, hp),
        "b1": _pad2d(params["b1"], 1, hp),
        "w2r": _pad2d(params["w2_rel"], hp, hp),
        "w2o": _pad2d(params["w2_root"], hp, hp),
        "b2": _pad2d(params["b2"], 1, hp),
        "w3r": _pad2d(params["w3_rel"], hp, cp),
        "w3o": _pad2d(params["w3_root"], hp, cp),
        "b3": _pad2d(params["b3"], 1, cp),
    }


def prepare_graph(a, p):
    """Pad adjacency / pool matrices ONCE; precompute PA = P@A; store A as bf16."""
    n = a.shape[0]
    g = p.shape[0]
    n_p = _round_up(n, LANE)
    g_p = _round_up(g, SUBLANE)
    a_pad = _pad2d(a, n_p, n_p)                    # f32, zero padded (exact)
    p_pad = _pad2d(p, g_p, n_p)
    pa = p_pad @ a_pad                             # (Gp, Np) mean-pooled adjacency
    # bf16 is exact for small integer edge counts (<= 256); v7x's MXU has no int path,
    # so bf16 (not int8) is the portable narrow format for A.
    return {"a": a_pad.astype(jnp.bfloat16), "p": p_pad, "pa": pa}


# ----------------------------------------------------------------------------
# Forward: pad x, single fused pallas_call, slice padded output
# ----------------------------------------------------------------------------
@functools.partial(jax.jit, static_argnames=("num_graphs", "num_classes"))
def gcn_forward(packed, graph, x, *, num_graphs, num_classes):
    a, p, pa = graph["a"], graph["p"], graph["pa"]
    n_p = a.shape[0]
    f0p, hp = packed["w1r"].shape
    cp = packed["w3r"].shape[1]
    g_p = p.shape[0]

    x_p = _pad2d(x, n_p, f0p)

    # Resident-set sizing for the scoped VMEM limit (everything lives in VMEM at once).
    resident = (a.size * 2 + x_p.size * 4
                + sum(v.size * 4 for v in packed.values())
                + p.size * 4 + pa.size * 4 + g_p * cp * 4)
    vmem_limit = int(min(128 << 20, max(4 * resident, 16 << 20)))

    flops = 2 * n_p * n_p * (f0p + hp)                 # A@h, layers 1 and 2
    flops += 2 * n_p * hp * (2 * f0p + 2 * hp)         # dense matmuls, layers 1 and 2
    flops += 2 * g_p * n_p * hp * 2                    # PA@h, P@h
    flops += 2 * g_p * hp * cp * 2                     # (.)@w3_rel, (.)@w3_root
    cost = pl.CostEstimate(flops=int(flops), transcendentals=0,
                           bytes_accessed=int(resident))

    vmem = pl.BlockSpec(memory_space=pltpu.MemorySpace.VMEM)
    out_p = pl.pallas_call(
        _gcn_fused_kernel,
        out_shape=jax.ShapeDtypeStruct((g_p, cp), jnp.float32),
        in_specs=[vmem] * 13,
        out_specs=vmem,
        compiler_params=pltpu.CompilerParams(vmem_limit_bytes=vmem_limit),
        cost_estimate=cost,
    )(a, x_p,
      packed["w1r"], packed["w1o"], packed["b1"],
      packed["w2r"], packed["w2o"], packed["b2"],
      packed["w3r"], packed["w3o"], packed["b3"],
      pa, p)
    return out_p[:num_graphs, :num_classes]


# ----------------------------------------------------------------------------
# Parameter / input construction
# ----------------------------------------------------------------------------
def init_params(key, num_features, hidden_channels, num_classes):
    dims = [(num_features, hidden_channels),
            (hidden_channels, hidden_channels),
            (hidden_channels, num_classes)]
    params = {}
    for i, (fi, fo) in enumerate(dims, start=1):
        key, k1, k2, k3 = jax.random.split(key, 4)
        scale = 1.0 / jnp.sqrt(jnp.float32(fi))
        params[f"w{i}_rel"] = jax.random.uniform(k1, (fi, fo), jnp.float32, -scale, scale)
        params[f"w{i}_root"] = jax.random.uniform(k2, (fi, fo), jnp.float32, -scale, scale)
        params[f"b{i}"] = jax.random.uniform(k3, (1, fo), jnp.float32, -scale, scale)
    return params


def build_graph(num_graphs, nodes_per_graph):
    """Deterministic batched graph: an undirected ring inside each graph."""
    n = num_graphs * nodes_per_graph
    src_list, dst_list = [], []
    for g in range(num_graphs):
        base = g * nodes_per_graph
        for i in range(nodes_per_graph):
            u = base + i
            v = base + (i + 1) % nodes_per_graph
            src_list += [u, v]
            dst_list += [v, u]
    edge_index = jnp.array([src_list, dst_list], dtype=jnp.int32)                 # [2, E]
    batch = jnp.repeat(jnp.arange(num_graphs, dtype=jnp.int32), nodes_per_graph)  # [N]

    # Dense adjacency: A[dst, src] += 1 for each edge (messages flow src -> dst).
    a = jnp.zeros((n, n), jnp.float32).at[edge_index[1], edge_index[0]].add(1.0)

    # Mean-pool matrix P[g, i] = (batch[i] == g) / count_g.
    onehot = (batch[None, :] == jnp.arange(num_graphs, dtype=jnp.int32)[:, None]).astype(jnp.float32)
    counts = onehot.sum(axis=1, keepdims=True)
    p = onehot / counts
    return edge_index, batch, a, p


# ----------------------------------------------------------------------------
# Main
# ----------------------------------------------------------------------------
if __name__ == "__main__":
    NUM_FEATURES = 8
    HIDDEN = 32
    NUM_CLASSES = 4
    NUM_GRAPHS = 4
    NODES_PER_GRAPH = 16
    N = NUM_GRAPHS * NODES_PER_GRAPH

    key = jax.random.PRNGKey(0)
    key, kx, kp = jax.random.split(key, 3)

    x = jax.random.normal(kx, (N, NUM_FEATURES), jnp.float32)
    edge_index, batch, a, p = build_graph(NUM_GRAPHS, NODES_PER_GRAPH)
    params = init_params(kp, NUM_FEATURES, HIDDEN, NUM_CLASSES)

    # One-time packing (outside the per-forward path).
    packed = jax.tree_util.tree_map(jax.block_until_ready, pack_params(params, NUM_FEATURES))
    graph = jax.tree_util.tree_map(jax.block_until_ready, prepare_graph(a, p))

    out = gcn_forward(packed, graph, x, num_graphs=NUM_GRAPHS, num_classes=NUM_CLASSES)
    out = jax.block_until_ready(out)
    assert out.shape == (NUM_GRAPHS, NUM_CLASSES), out.shape

    # Pure-JAX reference of the same math (unpadded, original association order).
    def ref_layer(h, wr, wo, b, relu):
        o = a @ h @ wr + h @ wo + b
        return jnp.maximum(o, 0.0) if relu else o

    h = ref_layer(x, params["w1_rel"], params["w1_root"], params["b1"], True)
    h = ref_layer(h, params["w2_rel"], params["w2_root"], params["b2"], True)
    h = ref_layer(h, params["w3_rel"], params["w3_root"], params["b3"], False)
    ref = p @ h
    assert jnp.allclose(out, ref, atol=1e-3, rtol=1e-3), float(jnp.max(jnp.abs(out - ref)))

    print("KERNEL_OK")
</pallas_src>

<mosaic_0001>
module attributes {stable_mosaic.version = 11 : i64} {
  func.func @_gcn_fused_kernel(%arg0: memref<128x128xbf16, #tpu.memory_space<vmem>>, %arg1: memref<128x128xf32, #tpu.memory_space<vmem>>, %arg2: memref<128x128xf32, #tpu.memory_space<vmem>>, %arg3: memref<128x128xf32, #tpu.memory_space<vmem>>, %arg4: memref<1x128xf32, #tpu.memory_space<vmem>>, %arg5: memref<128x128xf32, #tpu.memory_space<vmem>>, %arg6: memref<128x128xf32, #tpu.memory_space<vmem>>, %arg7: memref<1x128xf32, #tpu.memory_space<vmem>>, %arg8: memref<128x128xf32, #tpu.memory_space<vmem>>, %arg9: memref<128x128xf32, #tpu.memory_space<vmem>>, %arg10: memref<1x128xf32, #tpu.memory_space<vmem>>, %arg11: memref<8x128xf32, #tpu.memory_space<vmem>>, %arg12: memref<8x128xf32, #tpu.memory_space<vmem>>, %arg13: memref<8x128xf32, #tpu.memory_space<vmem>>) attributes {dimension_semantics = [], scalar_prefetch = 0 : i64, scratch_operands = 0 : i64, tpu.core_type = #tpu.core_type<tc>} {
    %c0 = arith.constant 0 : index
    %c0_0 = arith.constant 0 : index
    %0 = vector.load %arg0[%c0, %c0_0] : memref<128x128xbf16, #tpu.memory_space<vmem>>, vector<128x128xbf16>
    %1 = arith.extf %0 : vector<128x128xbf16> to vector<128x128xf32>
    %c0_1 = arith.constant 0 : index
    %c0_2 = arith.constant 0 : index
    %2 = vector.load %arg1[%c0_1, %c0_2] : memref<128x128xf32, #tpu.memory_space<vmem>>, vector<128x128xf32>
    %cst = arith.constant dense<0.000000e+00> : vector<128x128xf32>
    %3 = tpu.matmul %1, %2, %cst {dimension_numbers = #tpu.dot_dimension_numbers<[1], [0], [0], [1], [0, 0, 1, 1], [], []>} : vector<128x128xf32>, vector<128x128xf32>, vector<128x128xf32> -> vector<128x128xf32>
    %c0_3 = arith.constant 0 : index
    %c0_4 = arith.constant 0 : index
    %4 = vector.load %arg2[%c0_3, %c0_4] : memref<128x128xf32, #tpu.memory_space<vmem>>, vector<128x128xf32>
    %cst_5 = arith.constant dense<0.000000e+00> : vector<128x128xf32>
    %5 = tpu.matmul %3, %4, %cst_5 {dimension_numbers = #tpu.dot_dimension_numbers<[1], [0], [0], [1], [0, 0, 1, 1], [], []>} : vector<128x128xf32>, vector<128x128xf32>, vector<128x128xf32> -> vector<128x128xf32>
    %c0_6 = arith.constant 0 : index
    %c0_7 = arith.constant 0 : index
    %6 = vector.load %arg3[%c0_6, %c0_7] : memref<128x128xf32, #tpu.memory_space<vmem>>, vector<128x128xf32>
    %cst_8 = arith.constant dense<0.000000e+00> : vector<128x128xf32>
    %7 = tpu.matmul %2, %6, %cst_8 {dimension_numbers = #tpu.dot_dimension_numbers<[1], [0], [0], [1], [0, 0, 1, 1], [], []>} : vector<128x128xf32>, vector<128x128xf32>, vector<128x128xf32> -> vector<128x128xf32>
    %8 = arith.addf %5, %7 : vector<128x128xf32>
    %c0_9 = arith.constant 0 : index
    %c0_10 = arith.constant 0 : index
    %9 = vector.load %arg4[%c0_9, %c0_10] : memref<1x128xf32, #tpu.memory_space<vmem>>, vector<1x128xf32>
    %10 = vector.broadcast %9 : vector<1x128xf32> to vector<128x128xf32>
    %11 = arith.addf %8, %10 : vector<128x128xf32>
    %cst_11 = arith.constant 0.000000e+00 : f32
    %12 = vector.broadcast %cst_11 : f32 to vector<128x128xf32>
    %13 = arith.maximumf %11, %12 : vector<128x128xf32>
    %cst_12 = arith.constant dense<0.000000e+00> : vector<128x128xf32>
    %14 = tpu.matmul %1, %13, %cst_12 {dimension_numbers = #tpu.dot_dimension_numbers<[1], [0], [0], [1], [0, 0, 1, 1], [], []>} : vector<128x128xf32>, vector<128x128xf32>, vector<128x128xf32> -> vector<128x128xf32>
    %c0_13 = arith.constant 0 : index
    %c0_14 = arith.constant 0 : index
    %15 = vector.load %arg5[%c0_13, %c0_14] : memref<128x128xf32, #tpu.memory_space<vmem>>, vector<128x128xf32>
    %cst_15 = arith.constant dense<0.000000e+00> : vector<128x128xf32>
    %16 = tpu.matmul %14, %15, %cst_15 {dimension_numbers = #tpu.dot_dimension_numbers<[1], [0], [0], [1], [0, 0, 1, 1], [], []>} : vector<128x128xf32>, vector<128x128xf32>, vector<128x128xf32> -> vector<128x128xf32>
    %c0_16 = arith.constant 0 : index
    %c0_17 = arith.constant 0 : index
    %17 = vector.load %arg6[%c0_16, %c0_17] : memref<128x128xf32, #tpu.memory_space<vmem>>, vector<128x128xf32>
    %cst_18 = arith.constant dense<0.000000e+00> : vector<128x128xf32>
    %18 = tpu.matmul %13, %17, %cst_18 {dimension_numbers = #tpu.dot_dimension_numbers<[1], [0], [0], [1], [0, 0, 1, 1], [], []>} : vector<128x128xf32>, vector<128x128xf32>, vector<128x128xf32> -> vector<128x128xf32>
    %19 = arith.addf %16, %18 : vector<128x128xf32>
    %c0_19 = arith.constant 0 : index
    %c0_20 = arith.constant 0 : index
    %20 = vector.load %arg7[%c0_19, %c0_20] : memref<1x128xf32, #tpu.memory_space<vmem>>, vector<1x128xf32>
    %21 = vector.broadcast %20 : vector<1x128xf32> to vector<128x128xf32>
    %22 = arith.addf %19, %21 : vector<128x128xf32>
    %cst_21 = arith.constant 0.000000e+00 : f32
    %23 = vector.broadcast %cst_21 : f32 to vector<128x128xf32>
    %24 = arith.maximumf %22, %23 : vector<128x128xf32>
    %c0_22 = arith.constant 0 : index
    %c0_23 = arith.constant 0 : index
    %25 = vector.load %arg11[%c0_22, %c0_23] : memref<8x128xf32, #tpu.memory_space<vmem>>, vector<8x128xf32>
    %cst_24 = arith.constant dense<0.000000e+00> : vector<8x128xf32>
    %26 = tpu.matmul %25, %24, %cst_24 {dimension_numbers = #tpu.dot_dimension_numbers<[1], [0], [0], [1], [0, 0, 1, 1], [], []>} : vector<8x128xf32>, vector<128x128xf32>, vector<8x128xf32> -> vector<8x128xf32>
    %c0_25 = arith.constant 0 : index
    %c0_26 = arith.constant 0 : index
    %27 = vector.load %arg12[%c0_25, %c0_26] : memref<8x128xf32, #tpu.memory_space<vmem>>, vector<8x128xf32>
    %cst_27 = arith.constant dense<0.000000e+00> : vector<8x128xf32>
    %28 = tpu.matmul %27, %24, %cst_27 {dimension_numbers = #tpu.dot_dimension_numbers<[1], [0], [0], [1], [0, 0, 1, 1], [], []>} : vector<8x128xf32>, vector<128x128xf32>, vector<8x128xf32> -> vector<8x128xf32>
    %c0_28 = arith.constant 0 : index
    %c0_29 = arith.constant 0 : index
    %29 = vector.load %arg8[%c0_28, %c0_29] : memref<128x128xf32, #tpu.memory_space<vmem>>, vector<128x128xf32>
    %cst_30 = arith.constant dense<0.000000e+00> : vector<8x128xf32>
    %30 = tpu.matmul %26, %29, %cst_30 {dimension_numbers = #tpu.dot_dimension_numbers<[1], [0], [0], [1], [0, 0, 1, 1], [], []>} : vector<8x128xf32>, vector<128x128xf32>, vector<8x128xf32> -> vector<8x128xf32>
    %c0_31 = arith.constant 0 : index
    %c0_32 = arith.constant 0 : index
    %31 = vector.load %arg9[%c0_31, %c0_32] : memref<128x128xf32, #tpu.memory_space<vmem>>, vector<128x128xf32>
    %cst_33 = arith.constant dense<0.000000e+00> : vector<8x128xf32>
    %32 = tpu.matmul %28, %31, %cst_33 {dimension_numbers = #tpu.dot_dimension_numbers<[1], [0], [0], [1], [0, 0, 1, 1], [], []>} : vector<8x128xf32>, vector<128x128xf32>, vector<8x128xf32> -> vector<8x128xf32>
    %33 = arith.addf %30, %32 : vector<8x128xf32>
    %c0_34 = arith.constant 0 : index
    %c0_35 = arith.constant 0 : index
    %34 = vector.load %arg10[%c0_34, %c0_35] : memref<1x128xf32, #tpu.memory_space<vmem>>, vector<1x128xf32>
    %35 = vector.broadcast %34 : vector<1x128xf32> to vector<8x128xf32>
    %36 = arith.addf %33, %35 : vector<8x128xf32>
    %c0_36 = arith.constant 0 : index
    %c0_37 = arith.constant 0 : index
    %37 = vector.load %arg13[%c0_36, %c0_37] : memref<8x128xf32, #tpu.memory_space<vmem>>, vector<8x128xf32>
    tpu.vector_store %arg13[%c0_36, %c0_37], %36 {strides = array<i32>} : memref<8x128xf32, #tpu.memory_space<vmem>>, vector<8x128xf32>,
    return
  }
}

</mosaic_0001>

<bundles_post_ra>
// kernel: gcn_forward.1
= control target key start
LH: loop header
LB: loop body
LE: loop exit
PB: predicated region body
PF: predicated region fallthrough
CT: control target
= control target key end

     0   :  { %18 = vsyncpa [#allocation3], 0  ;;  %s3532_s0 = inlined_call_operand.hbm [shape: bf16[128,128], index: 0, kind: input, shape index: {}]   ;;  %s3533_s1 = inlined_call_operand.vmem [shape: f32[128,128], index: 1, kind: input, shape index: {}]   ;;  %s3534_s2 = inlined_call_operand.vmem [shape: f32[128,128], index: 2, kind: input, shape index: {}]   ;;  %s3535_s3 = inlined_call_operand.vmem [shape: f32[128,128], index: 3, kind: input, shape index: {}]   ;;  %s3536_s4 = inlined_call_operand.hbm [shape: f32[1,128], index: 4, kind: input, shape index: {}]   ;;  %s3537_s5 = inlined_call_operand.hbm [shape: f32[128,128], index: 5, kind: input, shape index: {}]   ;;  %s3538_s6 = inlined_call_operand.hbm [shape: f32[128,128], index: 6, kind: input, shape index: {}]   ;;  %s3539_s7 = inlined_call_operand.hbm [shape: f32[1,128], index: 7, kind: input, shape index: {}]   ;;  %s3540_s8 = inlined_call_operand.hbm [shape: f32[128,128], index: 8, kind: input, shape index: {}]   ;;  %s3541_s9 = inlined_call_operand.hbm [shape: f32[128,128], index: 9, kind: input, shape index: {}]   ;;  %s3542_s10 = inlined_call_operand.hbm [shape: f32[1,128], index: 10, kind: input, shape index: {}]   ;;  %s3543_s11 = inlined_call_operand.vmem [shape: f32[8,128], index: 11, kind: input, shape index: {}]   ;;  %s3544_s12 = inlined_call_operand.vmem [shape: f32[8,128], index: 12, kind: input, shape index: {}]   ;;  %s3545_s13 = inlined_call_operand.vmem [shape: f32[8,128], index: 13, kind: output, shape index: {}]  }
   0x1   :  { %19 = vsyncpa [#allocation5], 0 }
   0x2   :  { %20 = vsyncpa [#allocation8], 0 }
   0x3   :  { %21 = vsyncpa [#allocation11], 0 }
   0x4   :  { %22 = vsyncpa [#allocation14], 0  ;;  %s2838_s25 = smov [#allocation4]   ;;  %s2652_s29 = scalar_lea.hbm %s3536_s4, 16 }
   0x5   :  { %s47_s26 = sshll.u32 %s2838_s25, 4  ;;  %p2653_p0 = scmp.ne.s32.totalorder %s3536_s4, %s2652_s29  ;;  %s48_s26 = int_to_ptr.vmem [resolvable:$true] %s47_s26 }
   0x6   :  { %p2656_p1 = scmp.lt.u32.totalorder %s2652_s29, %s3536_s4 }
   0x8   :  { %p2658_p2 = pnand %p2656_p1, %p2653_p0 }
   0xa   :  { %2661 = shalt.err (!%p2658_p2)
}
   0xb   :  { %s2662_s17 = scalar_lea.vmem %s48_s26, 16  ;;  %s2666_s18 = scalar_lea.vmem %s48_s26, 32 }
   0xc   :  { %p2663_p3 = scmp.ne.s32.totalorder %s48_s26, %s2662_s17  ;;  %p2667_p4 = scmp.lt.s32.totalorder %s48_s26, %s48_s26 }
   0xd   :  { %p2668_p5 = scmp.lt.s32.totalorder %s2666_s18, %s2662_s17 }
   0xf   :  { %p2669_p6 = por %p2668_p5, %p2667_p4 }
  0x11   :  { %p2670_p7 = pnand %p2669_p6, %p2663_p3 }
  0x13   :  { %2673 = shalt.err (!%p2670_p7)
}
  0x14   :  { %50 = dma.hbm_to_vmem [thread:$0]  %s3536_s4, 16, %s48_s26, [#allocation5]  }
  0x15   :  { %s2839_s21 = smov [#allocation7]   ;;  %s2840_s23 = smov [#allocation10]  }
  0x16   :  { %s68_s22 = sshll.u32 %s2839_s21, 4  ;;  %s90_s24 = sshll.u32 %s2840_s23, 4  ;;  %s69_s22 = int_to_ptr.vmem [resolvable:$true] %s68_s22  ;;  %s91_s24 = int_to_ptr.vmem [resolvable:$true] %s90_s24 }
  0x17   :  { %s2674_s28 = scalar_lea.hbm %s3538_s6, 2048 }
  0x18   :  { %p2675_p8 = scmp.ne.s32.totalorder %s3538_s6, %s2674_s28  ;;  %p2678_p9 = scmp.lt.u32.totalorder %s2674_s28, %s3538_s6 }
  0x1a   :  { %p2680_p10 = pnand %p2678_p9, %p2675_p8 }
  0x1c   :  { %2683 = shalt.err (!%p2680_p10)
}
  0x1d   :  { %s2684_s4 = scalar_lea.vmem %s69_s22, 2048  ;;  %p2689_p12 = scmp.lt.s32.totalorder %s69_s22, %s69_s22 }
  0x1e   :  { %p2685_p11 = scmp.ne.s32.totalorder %s69_s22, %s2684_s4  ;;  %p2690_p13 = scmp.lt.s32.totalorder %s2684_s4, %s2684_s4 }
  0x20   :  { %p2691_p0 = por %p2690_p13, %p2689_p12 }
  0x22   :  { %p2692_p1 = pnand %p2691_p0, %p2685_p11 }
  0x24   :  { %2695 = shalt.err (!%p2692_p1)
}
  0x25   :  { %s2841_s26 = smov 128   ;;  %s2842_s16 = smov 8  }
  0x26   :  { %74 = dma.hbm_to_vmem [thread:$0]  %s3538_s6, 2048, %s69_s22, [#allocation8], %s2841_s26, %s2841_s26, %s2842_s16  }
  0x27   :  { %s2696_s21 = scalar_lea.hbm %s3540_s8, 2048 }
  0x28   :  { %p2697_p2 = scmp.ne.s32.totalorder %s3540_s8, %s2696_s21  ;;  %p2700_p3 = scmp.lt.u32.totalorder %s2696_s21, %s3540_s8 }
  0x2a   :  { %p2702_p4 = pnand %p2700_p3, %p2697_p2 }
  0x2c   :  { %2705 = shalt.err (!%p2702_p4)
}
  0x2d   :  { %s2706_s29 = scalar_lea.vmem %s91_s24, 2048  ;;  %p2711_p6 = scmp.lt.s32.totalorder %s91_s24, %s91_s24 }
  0x2e   :  { %p2707_p5 = scmp.ne.s32.totalorder %s91_s24, %s2706_s29  ;;  %p2712_p7 = scmp.lt.s32.totalorder %s2706_s29, %s2706_s29 }
  0x30   :  { %p2713_p8 = por %p2712_p7, %p2711_p6 }
  0x32   :  { %p2714_p9 = pnand %p2713_p8, %p2707_p5 }
  0x34   :  { %2717 = shalt.err (!%p2714_p9)
}
  0x35   :  { %96 = dma.hbm_to_vmem [thread:$0]  %s3540_s8, 2048, %s91_s24, [#allocation11], %s2841_s26, %s2841_s26, %s2842_s16  }
  0x36   :  { %s2843_s30 = smov [#allocation2]   ;;  %s2718_s17 = scalar_lea.hbm %s3532_s0, 1024 }
  0x37   :  { %s28_s14 = sshll.u32 %s2843_s30, 4  ;;  %p2719_p10 = scmp.ne.s32.totalorder %s3532_s0, %s2718_s17  ;;  %s29_s14 = int_to_ptr.vmem [resolvable:$true] %s28_s14 }
  0x38   :  { %p2722_p11 = scmp.lt.u32.totalorder %s2718_s17, %s3532_s0 }
  0x3a   :  { %p2724_p12 = pnand %p2722_p11, %p2719_p10 }
  0x3c   :  { %2727 = shalt.err (!%p2724_p12)
}
  0x3d   :  { %s2728_s23 = scalar_lea.vmem %s29_s14, 1024  ;;  %p2733_p0 = scmp.lt.s32.totalorder %s29_s14, %s29_s14 }
  0x3e   :  { %p2729_p13 = scmp.ne.s32.totalorder %s29_s14, %s2728_s23  ;;  %p2734_p1 = scmp.lt.s32.totalorder %s2728_s23, %s2728_s23 }
  0x40   :  { %p2735_p2 = por %p2734_p1, %p2733_p0 }
  0x42   :  { %p2736_p3 = pnand %p2735_p2, %p2729_p13 }
  0x44   :  { %2739 = shalt.err (!%p2736_p3)
}
  0x45   :  { %s2844_s8 = smov 64   ;;  %s2845_s24 = smov 4  }
  0x46   :  { %34 = dma.hbm_to_vmem [thread:$0]  %s3532_s0, 1024, %s29_s14, [#allocation3], %s2844_s8, %s2844_s8, %s2845_s24  }
  0x47   :  { %s2846_s28 = smov [#allocation6]   ;;  %s2847_s6 = smov [#allocation9]  }
  0x48   :  { %s56_s29 = sshll.u32 %s2846_s28, 4  ;;  %s81_s22 = sshll.u32 %s2847_s6, 4  ;;  %s57_s29 = int_to_ptr.vmem [resolvable:$true] %s56_s29  ;;  %s82_s22 = int_to_ptr.vmem [resolvable:$true] %s81_s22 }
  0x49   :  { %s2740_s4 = scalar_lea.hbm %s3537_s5, 2048 }
  0x4a   :  { %p2741_p4 = scmp.ne.s32.totalorder %s3537_s5, %s2740_s4  ;;  %p2744_p5 = scmp.lt.u32.totalorder %s2740_s4, %s3537_s5 }
  0x4c   :  { %p2746_p6 = pnand %p2744_p5, %p2741_p4 }
  0x4e   :  { %2749 = shalt.err (!%p2746_p6)
}
  0x4f   :  { %s2750_s0 = scalar_lea.vmem %s57_s29, 2048  ;;  %p2755_p8 = scmp.lt.s32.totalorder %s57_s29, %s57_s29 }
  0x50   :  { %p2751_p7 = scmp.ne.s32.totalorder %s57_s29, %s2750_s0  ;;  %p2756_p9 = scmp.lt.s32.totalorder %s2750_s0, %s2750_s0 }
  0x52   :  { %p2757_p10 = por %p2756_p9, %p2755_p8 }
  0x54   :  { %p2758_p11 = pnand %p2757_p10, %p2751_p7 }
  0x56   :  { %2761 = shalt.err (!%p2758_p11)
}
  0x57   :  { %62 = dma.hbm_to_vmem [thread:$0]  %s3537_s5, 2048, %s57_s29, [#allocation5], %s2841_s26, %s2841_s26, %s2842_s16  }
  0x58   :  { %s2762_s24 = scalar_lea.hbm %s3539_s7, 16 }
  0x59   :  { %p2763_p12 = scmp.ne.s32.totalorder %s3539_s7, %s2762_s24  ;;  %p2766_p13 = scmp.lt.u32.totalorder %s2762_s24, %s3539_s7 }
  0x5b   :  { %p2768_p0 = pnand %p2766_p13, %p2763_p12 }
  0x5d   :  { %2771 = shalt.err (!%p2768_p0)
}
  0x5e   :  { %s2772_s30 = scalar_lea.vmem %s82_s22, 16  ;;  %s2776_s15 = scalar_lea.vmem %s82_s22, 32 }
  0x5f   :  { %p2773_p1 = scmp.ne.s32.totalorder %s82_s22, %s2772_s30  ;;  %p2777_p2 = scmp.lt.s32.totalorder %s82_s22, %s82_s22 }
  0x60   :  { %p2778_p3 = scmp.lt.s32.totalorder %s2776_s15, %s2772_s30 }
  0x62   :  { %p2779_p4 = por %p2778_p3, %p2777_p2 }
  0x64   :  { %p2780_p5 = pnand %p2779_p4, %p2773_p1 }
  0x66   :  { %2783 = shalt.err (!%p2780_p5)
}
  0x67   :  { %84 = dma.hbm_to_vmem [thread:$0]  %s3539_s7, 16, %s82_s22, [#allocation8]  }
  0x68   :  { %s2848_s4 = smov [#allocation12]   ;;  %s2849_s18 = smov [#allocation13]  }
  0x69   :  { %s102_s17 = sshll.u32 %s2848_s4, 4  ;;  %s115_s19 = sshll.u32 %s2849_s18, 4  ;;  %s103_s17 = int_to_ptr.vmem [resolvable:$true] %s102_s17  ;;  %s116_s19 = int_to_ptr.vmem [resolvable:$true] %s115_s19 }
  0x6a   :  { %s2784_s14 = scalar_lea.hbm %s3541_s9, 2048 }
  0x6b   :  { %p2785_p6 = scmp.ne.s32.totalorder %s3541_s9, %s2784_s14  ;;  %p2788_p7 = scmp.lt.u32.totalorder %s2784_s14, %s3541_s9 }
  0x6d   :  { %p2790_p8 = pnand %p2788_p7, %p2785_p6 }
  0x6f   :  { %2793 = shalt.err (!%p2790_p8)
}
  0x70   :  { %s2794_s7 = scalar_lea.vmem %s103_s17, 2048  ;;  %p2799_p10 = scmp.lt.s32.totalorder %s103_s17, %s103_s17 }
  0x71   :  { %p2795_p9 = scmp.ne.s32.totalorder %s103_s17, %s2794_s7  ;;  %p2800_p11 = scmp.lt.s32.totalorder %s2794_s7, %s2794_s7 }
  0x73   :  { %p2801_p12 = por %p2800_p11, %p2799_p10 }
  0x75   :  { %p2802_p13 = pnand %p2801_p12, %p2795_p9 }
  0x77   :  { %2805 = shalt.err (!%p2802_p13)
}
  0x78   :  { %108 = dma.hbm_to_vmem [thread:$0]  %s3541_s9, 2048, %s103_s17, [#allocation11], %s2841_s26, %s2841_s26, %s2842_s16  }
  0x79   :  { %s2806_s6 = scalar_lea.hbm %s3542_s10, 16 }
  0x7a   :  { %p2807_p0 = scmp.ne.s32.totalorder %s3542_s10, %s2806_s6  ;;  %p2810_p1 = scmp.lt.u32.totalorder %s2806_s6, %s3542_s10 }
  0x7c   :  { %p2812_p2 = pnand %p2810_p1, %p2807_p0 }
  0x7e   :  { %2815 = shalt.err (!%p2812_p2)
}
  0x7f   :  { %s2816_s4 = scalar_lea.vmem %s116_s19, 16  ;;  %s2820_s18 = scalar_lea.vmem %s116_s19, 32 }
  0x80   :  { %p2817_p3 = scmp.ne.s32.totalorder %s116_s19, %s2816_s4  ;;  %p2821_p4 = scmp.lt.s32.totalorder %s116_s19, %s116_s19 }
  0x81   :  { %p2822_p5 = scmp.lt.s32.totalorder %s2820_s18, %s2816_s4 }
  0x83   :  { %p2823_p6 = por %p2822_p5, %p2821_p4 }
  0x85   :  { %p2824_p7 = pnand %p2823_p6, %p2817_p3 }
  0x87   :  { %2827 = shalt.err (!%p2824_p7)
}
  0x88   :  { %118 = dma.hbm_to_vmem [thread:$0]  %s3542_s10, 16, %s116_s19, [#allocation14]  }
  0x89   :  { %2828 = dma.done.wait [#allocation3], 1024  }
  0x8a   :  { %2829 = vsyncadd [#allocation3], 4294966272 }
  0x8b   :  { %2830 = dma.done.wait [#allocation5], 2064  }
  0x8c   :  { %2831 = vsyncadd [#allocation5], 4294965232 }
  0x8d   :  { %2832 = dma.done.wait [#allocation8], 2064  }
  0x8e   :  { %2833 = vsyncadd [#allocation8], 4294965232 }
  0x8f   :  { %2834 = dma.done.wait [#allocation11], 4096  }
  0x90   :  { %2835 = vsyncadd [#allocation11], 4294963200 }
  0x91   :  { %2836 = dma.done.wait [#allocation14], 16  }
  0x92   :  { %2837 = vsyncadd [#allocation14], 4294967280  ;;  %v179_v0 = vld [vmem:[%s3533_s1] sm:$0xff]  ;;  %v3037_v1 = vld [vmem:[%s3533_s1 + $0x8] sm:$0xff]  ;;  %vm2851_vm0 = vmmov 0  }
  0x93   :  { %v3042_v2 = vld [vmem:[%s3533_s1 + $0x10] sm:$0xff]  ;;  %v2317_v3 = vpack.c.bf16 %v3037_v1, %v179_v0  ;;  %v3048_v4 = vld [vmem:[%s3533_s1 + $0x18] sm:$0xff]  ;;  %1929 = vmatprep.mubr.f32.mxu1 %v179_v0  ;;  %v3055_v6 = vld [vmem:[%s3533_s1 + $0x20] sm:$0xff] }
  0x94   :  { %v2321_v5 = vpack.c.bf16 %v3048_v4, %v3042_v2  ;;  %v3060_v7 = vld [vmem:[%s3533_s1 + $0x28] sm:$0xff]  ;;  %v3064_v9 = vld [vmem:[#allocation2] sm:$0xff]   ;;  %v3069_v10 = vld [vmem:[%s3533_s1 + $0x30] sm:$0xff] }
  0x95   :  { %2318 = vmatprep.subr.bf16.mxu0 %v2317_v3  ;;  %v2325_v8 = vpack.c.bf16 %v3060_v7, %v3055_v6  ;;  %v3074_v11 = vld [vmem:[%s3533_s1 + $0x38] sm:$0xff]  ;;  %v1544_v12 = vunpack.c.l.bf16 %v3064_v9  ;;  %v356_v13 = vld [vmem:[%s3535_s3] sm:$0xff]  ;;  %v357_v14 = vld [vmem:[%s3535_s3 + $0x8] sm:$0xff]  ;;  %v1545_v48 = vunpack.c.h.bf16 %v3064_v9 }
  0x96   :  { %2320 = vmatpush3.bf16.msra.mxu0 %v2317_v3  ;;  %v358_v15 = vld [vmem:[%s3535_s3 + $0x10] sm:$0xff]  ;;  %v2329_v16 = vpack.c.bf16 %v3074_v11, %v3069_v10  ;;  %v359_v17 = vld [vmem:[%s3535_s3 + $0x18] sm:$0xff]  ;;  %v3096_v18 = vld [vmem:[%s3533_s1 + $0x40] sm:$0xff]  ;;  %v2349_v20 = vpack.c.bf16 %v357_v14, %v356_v13 }
  0x97   :  { %2322 = vmatprep.subr.bf16.mxu0 %v2321_v5  ;;  %1873 = vmatprep.mubr.f32.mxu0 %v1544_v12  ;;  %v3101_v19 = vld [vmem:[%s3533_s1 + $0x48] sm:$0xff]  ;;  %v2353_v21 = vpack.c.bf16 %v359_v17, %v358_v15  ;;  %v360_v22 = vld [vmem:[%s3535_s3 + $0x20] sm:$0xff]  ;;  %v3114_v25 = vld [vmem:[%s3533_s1 + $0x50] sm:$0xff] }
  0x98   :  { %v361_v23 = vld [vmem:[%s3535_s3 + $0x28] sm:$0xff]  ;;  %2350 = vmatprep.subr.bf16.mxu1 %v2349_v20  ;;  %v2333_v24 = vpack.c.bf16 %v3101_v19, %v3096_v18  ;;  %v3119_v26 = vld [vmem:[%s3533_s1 + $0x58] sm:$0xff]  ;;  %v362_v28 = vld [vmem:[%s3535_s3 + $0x30] sm:$0xff] }
  0x99   :  { %2352 = vmatpush3.bf16.msra.mxu1 %v2349_v20  ;;  %v2357_v27 = vpack.c.bf16 %v361_v23, %v360_v22  ;;  %v363_v29 = vld [vmem:[%s3535_s3 + $0x38] sm:$0xff]  ;;  %v2337_v30 = vpack.c.bf16 %v3119_v26, %v3114_v25  ;;  %v3132_v31 = vld [vmem:[%s3533_s1 + $0x60] sm:$0xff]  ;;  %v3137_v32 = vld [vmem:[%s3533_s1 + $0x68] sm:$0xff] }
  0x9a   :  { %2324 = vmatpush3.bf16.msra.mxu0 %v2321_v5  ;;  %2354 = vmatprep.subr.bf16.mxu1 %v2353_v21  ;;  %v2361_v33 = vpack.c.bf16 %v363_v29, %v362_v28  ;;  %v364_v34 = vld [vmem:[%s3535_s3 + $0x40] sm:$0xff]  ;;  %v365_v35 = vld [vmem:[%s3535_s3 + $0x48] sm:$0xff]  ;;  %v2341_v36 = vpack.c.bf16 %v3137_v32, %v3132_v31  ;;  %v3150_v37 = vld [vmem:[%s3533_s1 + $0x70] sm:$0xff] }
  0x9b   :  { %2326 = vmatprep.subr.bf16.mxu0 %v2325_v8  ;;  %v3155_v38 = vld [vmem:[%s3533_s1 + $0x78] sm:$0xff]  ;;  %v2365_v39 = vpack.c.bf16 %v365_v35, %v364_v34  ;;  %v366_v40 = vld [vmem:[%s3535_s3 + $0x50] sm:$0xff]  ;;  %v368_v44 = vld [vmem:[%s3535_s3 + $0x60] sm:$0xff] }
  0x9c   :  { %v367_v41 = vld [vmem:[%s3535_s3 + $0x58] sm:$0xff]  ;;  %v2345_v42 = vpack.c.bf16 %v3155_v38, %v3150_v37  ;;  %v369_v45 = vld [vmem:[%s3535_s3 + $0x68] sm:$0xff]  ;;  %v370_v49 = vld [vmem:[%s3535_s3 + $0x70] sm:$0xff] }
  0x9d   :  { %2356 = vmatpush3.bf16.msra.mxu1 %v2353_v21  ;;  %v2369_v43 = vpack.c.bf16 %v367_v41, %v366_v40  ;;  %v3171_v46 = vld [vmem:[#allocation2 + $0x8] sm:$0xff]   ;;  %v2373_v47 = vpack.c.bf16 %v369_v45, %v368_v44  ;;  %v371_v50 = vld [vmem:[%s3535_s3 + $0x78] sm:$0xff]  ;;  %v3181_v52 = vld [vmem:[#allocation2 + $0x10] sm:$0xff]  }
  0x9e   :  { %2328 = vmatpush3.bf16.msra.mxu0 %v2325_v8  ;;  %2358 = vmatprep.subr.bf16.mxu1 %v2357_v27  ;;  %v1548_v51 = vunpack.c.l.bf16 %v3171_v46  ;;  %v2377_v53 = vpack.c.bf16 %v371_v50, %v370_v49  ;;  %v1549_v54 = vunpack.c.h.bf16 %v3171_v46  ;;  %v340_v55 = vld [vmem:[%s3534_s2] sm:$0xff]  ;;  %v341_v56 = vld [vmem:[%s3534_s2 + $0x8] sm:$0xff]  ;;  %v1552_v57 = vunpack.c.l.bf16 %v3181_v52  ;;  %v3195_v58 = vld [vmem:[#allocation2 + $0x18] sm:$0xff]  }
  0x9f   :  { %2330 = vmatprep.subr.bf16.mxu0 %v2329_v16  ;;  %v2381_v59 = vpack.c.bf16 %v341_v56, %v340_v55  ;;  %v1553_v60 = vunpack.c.h.bf16 %v3181_v52  ;;  %v342_v61 = vld [vmem:[%s3534_s2 + $0x10] sm:$0xff]  ;;  %v343_v62 = vld [vmem:[%s3534_s2 + $0x18] sm:$0xff]  ;;  %v1556_v63 = vunpack.c.l.bf16 %v3195_v58  ;;  %v3209_v0 = vld [vmem:[#allocation2 + $0x20] sm:$0xff]   ;;  %v1557_v5 = vunpack.c.h.bf16 %v3195_v58 }
  0xa0   :  { %v2385_v3 = vpack.c.bf16 %v343_v62, %v342_v61  ;;  %v344_v8 = vld [vmem:[%s3534_s2 + $0x20] sm:$0xff]  ;;  %v345_v13 = vld [vmem:[%s3534_s2 + $0x28] sm:$0xff]  ;;  %v1560_v14 = vunpack.c.l.bf16 %v3209_v0  ;;  %v1561_v17 = vunpack.c.h.bf16 %v3209_v0  ;;  %v346_v20 = vld [vmem:[%s3534_s2 + $0x30] sm:$0xff] }
  0xa1   :  { %2360 = vmatpush3.bf16.msra.mxu1 %v2357_v27  ;;  %v3224_v15 = vld [vmem:[#allocation2 + $0x28] sm:$0xff]   ;;  %v3240_v21 = vld [vmem:[#allocation2 + $0x30] sm:$0xff]   ;;  %v3256_v27 = vld [vmem:[#allocation2 + $0x38] sm:$0xff]  }
  0xa2   :  { %2332 = vmatpush3.bf16.msra.mxu0 %v2329_v16  ;;  %2362 = vmatprep.subr.bf16.mxu1 %v2361_v33  ;;  %v2389_v16 = vpack.c.bf16 %v345_v13, %v344_v8  ;;  %v1565_v23 = vunpack.c.h.bf16 %v3224_v15  ;;  %v1569_v29 = vunpack.c.h.bf16 %v3240_v21  ;;  %v1573_v34 = vunpack.c.h.bf16 %v3256_v27  ;;  %v352_v35 = vld [vmem:[%s3534_s2 + $0x60] sm:$0xff]  ;;  %v871_v9 = vld [vmem:[#allocation7 + $0x48] sm:$0xff] }
  0xa3   :  { %2334 = vmatprep.subr.bf16.mxu0 %v2333_v24  ;;  %v873_v46 = vld [vmem:[#allocation7 + $0x58] sm:$0xff]  ;;  %v875_v52 = vld [vmem:[#allocation7 + $0x68] sm:$0xff] }
  0xa4   :  { %v877_v58 = vld [vmem:[#allocation7 + $0x78] sm:$0xff]  ;;  %v847_v0 = vld [vmem:[#allocation6 + $0x8] sm:$0xff] }
  0xa5   :  { %2364 = vmatpush3.bf16.msra.mxu1 %v2361_v33 }
  0xa6   :  { %2336 = vmatpush3.bf16.msra.mxu0 %v2333_v24  ;;  %2366 = vmatprep.subr.bf16.mxu1 %v2365_v39  ;;  %v348_v24 = vld [vmem:[%s3534_s2 + $0x40] sm:$0xff] }
  0xa7   :  { %2338 = vmatprep.subr.bf16.mxu0 %v2337_v30 }
  0xa9   :  { %2368 = vmatpush3.bf16.msra.mxu1 %v2365_v39  ;;  %v355_v39 = vld [vmem:[%s3534_s2 + $0x78] sm:$0xff] }
  0xaa   :  { %2340 = vmatpush3.bf16.msra.mxu0 %v2337_v30  ;;  %2370 = vmatprep.subr.bf16.mxu1 %v2369_v43  ;;  %v350_v30 = vld [vmem:[%s3534_s2 + $0x50] sm:$0xff] }
  0xab   :  { %2342 = vmatprep.subr.bf16.mxu0 %v2341_v36 }
  0xad   :  { %2372 = vmatpush3.bf16.msra.mxu1 %v2369_v43 }
  0xae   :  { %2344 = vmatpush3.bf16.msra.mxu0 %v2341_v36  ;;  %2374 = vmatprep.subr.bf16.mxu1 %v2373_v47  ;;  %v353_v36 = vld [vmem:[%s3534_s2 + $0x68] sm:$0xff] }
  0xaf   :  { %2346 = vmatprep.subr.bf16.mxu0 %v2345_v42 }
  0xb1   :  { %2376 = vmatpush3.bf16.msra.mxu1 %v2373_v47 }
  0xb2   :  { %2348 = vmatpush3.bf16.msra.mxu0 %v2345_v42  ;;  %2378 = vmatprep.subr.bf16.mxu1 %v2377_v53 }
  0xb5   :  { %1874 = vmatmul.mubr.f32.vlgmr.msra.gmra.mrb[0].mxu0 %v1545_v48  ;;  %2380 = vmatpush3.bf16.msra.mxu1 %v2377_v53  ;;  %v3301_v53 = vld [vmem:[#allocation4] ss:$0 sm:$0xff] }
  0xb6   :  { %1876 = vmatprep.mubr.f32.mxu0 %v1548_v51  ;;  %2382 = vmatprep.subr.bf16.mxu1 %v2381_v59 }
  0xb8   :  { %1930 = vmatmul.mubr.f32.vlgmr.msra.gmra.mrb[0].mxu1 %v3037_v1  ;;  %v347_v1 = vld [vmem:[%s3534_s2 + $0x38] sm:$0xff] }
  0xb9   :  { %1877 = vmatmul.mubr.f32.gmra.mrb[2].mxu0 %v1549_v54  ;;  %2384 = vmatpush3.bf16.msra.mxu1 %v2381_v59  ;;  %v2393_v22 = vpack.c.bf16 %v347_v1, %v346_v20 }
  0xba   :  { %1879 = vmatprep.mubr.f32.mxu0 %v1552_v57  ;;  %1932 = vmatprep.mubr.f32.mxu1 %v3042_v2  ;;  %v1564_v2 = vunpack.c.l.bf16 %v3224_v15  ;;  %v849_v15 = vld [vmem:[#allocation6 + $0x18] sm:$0xff] }
  0xbb   :  { %2386 = vmatprep.subr.bf16.mxu1 %v2385_v3 }
  0xbc   :  { %1933 = vmatmul.mubr.f32.gmra.mrb[2].mxu1 %v3048_v4  ;;  %v349_v4 = vld [vmem:[%s3534_s2 + $0x48] sm:$0xff] }
  0xbd   :  { %1880 = vmatmul.mubr.f32.gmra.mrb[4].mxu0 %v1553_v60  ;;  %2388 = vmatpush3.bf16.msra.mxu1 %v2385_v3  ;;  %v2397_v28 = vpack.c.bf16 %v349_v4, %v348_v24 }
  0xbe   :  { %1882 = vmatprep.mubr.f32.mxu0 %v1556_v63  ;;  %1935 = vmatprep.mubr.f32.mxu1 %v3055_v6  ;;  %v1568_v6 = vunpack.c.l.bf16 %v3240_v21  ;;  %v851_v21 = vld [vmem:[#allocation6 + $0x28] sm:$0xff] }
  0xbf   :  { %2390 = vmatprep.subr.bf16.mxu1 %v2389_v16 }
  0xc0   :  { %1936 = vmatmul.mubr.f32.gmra.mrb[4].mxu1 %v3060_v7  ;;  %v351_v7 = vld [vmem:[%s3534_s2 + $0x58] sm:$0xff] }
  0xc1   :  { %1883 = vmatmul.mubr.f32.gmra.mrb[6].mxu0 %v1557_v5  ;;  %2392 = vmatpush3.bf16.msra.mxu1 %v2389_v16  ;;  %v2401_v33 = vpack.c.bf16 %v351_v7, %v350_v30 }
  0xc2   :  { %1885 = vmatprep.mubr.f32.mxu0 %v1560_v14  ;;  %1938 = vmatprep.mubr.f32.mxu1 %v3069_v10  ;;  %v1572_v10 = vunpack.c.l.bf16 %v3256_v27  ;;  %v853_v27 = vld [vmem:[#allocation6 + $0x38] sm:$0xff] }
  0xc3   :  { %2394 = vmatprep.subr.bf16.mxu1 %v2393_v22 }
  0xc4   :  { %1939 = vmatmul.mubr.f32.gmra.mrb[6].mxu1 %v3074_v11  ;;  %v2405_v11 = vpack.c.bf16 %v353_v36, %v352_v35 }
  0xc5   :  { %1886 = vmatmul.mubr.f32.gmra.mrb[8].mxu0 %v1561_v17  ;;  %2396 = vmatpush3.bf16.msra.mxu1 %v2393_v22 }
  0xc6   :  { %1888 = vmatprep.mubr.f32.mxu0 %v1564_v2  ;;  %1941 = vmatprep.mubr.f32.mxu1 %v3096_v18  ;;  %v354_v18 = vld [vmem:[%s3534_s2 + $0x70] sm:$0xff] }
  0xc7   :  { %2398 = vmatprep.subr.bf16.mxu1 %v2397_v28 }
  0xc8   :  { %1942 = vmatmul.mubr.f32.gmra.mrb[8].mxu1 %v3101_v19  ;;  %v2409_v19 = vpack.c.bf16 %v355_v39, %v354_v18 }
  0xc9   :  { %1889 = vmatmul.mubr.f32.gmra.mrb[10].mxu0 %v1565_v23  ;;  %2400 = vmatpush3.bf16.msra.mxu1 %v2397_v28 }
  0xca   :  { %1891 = vmatprep.mubr.f32.mxu0 %v1568_v6  ;;  %1944 = vmatprep.mubr.f32.mxu1 %v3114_v25 }
  0xcb   :  { %2402 = vmatprep.subr.bf16.mxu1 %v2401_v33 }
  0xcc   :  { %1945 = vmatmul.mubr.f32.gmra.mrb[10].mxu1 %v3119_v26 }
  0xcd   :  { %1892 = vmatmul.mubr.f32.gmra.mrb[12].mxu0 %v1569_v29  ;;  %2404 = vmatpush3.bf16.msra.mxu1 %v2401_v33 }
  0xce   :  { %1894 = vmatprep.mubr.f32.mxu0 %v1572_v10  ;;  %1947 = vmatprep.mubr.f32.mxu1 %v3132_v31 }
  0xcf   :  { %2406 = vmatprep.subr.bf16.mxu1 %v2405_v11 }
  0xd0   :  { %1948 = vmatmul.mubr.f32.gmra.mrb[12].mxu1 %v3137_v32 }
  0xd1   :  { %1895 = vmatmul.mubr.f32.gmra.mrb[14].mxu0 %v1573_v34  ;;  %2408 = vmatpush3.bf16.msra.mxu1 %v2405_v11 }
  0xd2   :  { %2041 = vmatprep.mubr.f32.mxu0 %v1544_v12  ;;  %1950 = vmatprep.mubr.f32.mxu1 %v3150_v37 }
  0xd3   :  { %2410 = vmatprep.subr.bf16.mxu1 %v2409_v19 }
  0xd4   :  { %1951 = vmatmul.mubr.f32.gmra.mrb[14].mxu1 %v3155_v38 }
  0xd5   :  { %2412 = vmatpush3.bf16.msra.mxu1 %v2409_v19 }
 0x188   :  { %v1875_v25 = vpop.f32.mrb[0].mxu0 }
 0x189   :  { %v261_v40 = vpop.f32.mrb[1].mxu0 }
 0x18a   :  { %1985 = vmatprep.mubr.f32.mxu1 %v261_v40 }
 0x18b   :  { %1986 = vmatmul.mubr.f32.vlgmr.msra.gmra.mrb[0].mxu1 %v1875_v25 }
 0x18c   :  { %v1878_v26 = vpop.f32.mrb[2].mxu0 }
 0x18d   :  { %v271_v12 = vpop.f32.mrb[3].mxu0 }
 0x18e   :  { %1988 = vmatprep.mubr.f32.mxu1 %v271_v12 }
 0x18f   :  { %1989 = vmatmul.mubr.f32.gmra.mrb[2].mxu1 %v1878_v26 }
 0x190   :  { %v1881_v31 = vpop.f32.mrb[4].mxu0 }
 0x191   :  { %v281_v41 = vpop.f32.mrb[5].mxu0 }
 0x192   :  { %1991 = vmatprep.mubr.f32.mxu1 %v281_v41 }
 0x193   :  { %1992 = vmatmul.mubr.f32.gmra.mrb[4].mxu1 %v1881_v31 }
 0x194   :  { %v1884_v32 = vpop.f32.mrb[6].mxu0 }
 0x195   :  { %v291_v42 = vpop.f32.mrb[7].mxu0 }
 0x196   :  { %1994 = vmatprep.mubr.f32.mxu1 %v291_v42 }
 0x197   :  { %1995 = vmatmul.mubr.f32.gmra.mrb[6].mxu1 %v1884_v32 }
 0x198   :  { %v1887_v37 = vpop.f32.mrb[8].mxu0 }
 0x199   :  { %v301_v43 = vpop.f32.mrb[9].mxu0 }
 0x19a   :  { %1997 = vmatprep.mubr.f32.mxu1 %v301_v43 }
 0x19b   :  { %1998 = vmatmul.mubr.f32.gmra.mrb[8].mxu1 %v1887_v37 }
 0x19c   :  { %v1890_v38 = vpop.f32.mrb[10].mxu0 }
 0x19d   :  { %v311_v44 = vpop.f32.mrb[11].mxu0 }
 0x19e   :  { %2000 = vmatprep.mubr.f32.mxu1 %v311_v44 }
 0x19f   :  { %2001 = vmatmul.mubr.f32.gmra.mrb[10].mxu1 %v1890_v38 }
 0x1a0   :  { %v1893_v45 = vpop.f32.mrb[12].mxu0 }
 0x1a1   :  { %v321_v47 = vpop.f32.mrb[13].mxu0 }
 0x1a2   :  { %2003 = vmatprep.mubr.f32.mxu1 %v321_v47 }
 0x1a3   :  { %2004 = vmatmul.mubr.f32.gmra.mrb[12].mxu1 %v1893_v45 }
 0x1a4   :  { %v1896_v49 = vpop.f32.mrb[14].mxu0 }
 0x1a5   :  { %v331_v50 = vpop.f32.mrb[15].mxu0 }
 0x1a6   :  { %2006 = vmatprep.mubr.f32.mxu1 %v331_v50 }
 0x1a7   :  { %2007 = vmatmul.mubr.f32.gmra.mrb[14].mxu1 %v1896_v49 }
 0x25e   :  { %v1987_v55 = vpop.f32.mrb[0].mxu1 }
 0x25f   :  { %v3304_v56 = vadd.f32 %v1987_v55, %v3301_v53  ;;  %v583_v59 = vpop.f32.mrb[1].mxu1 }
 0x260   :  { %v3307_v61 = vadd.f32 %v3301_v53, %v583_v59 }
 0x261   :  { %v686_v62 = vmax.f32 %v3304_v56, 0.0  ;;  %v855_v56 = vld [vmem:[#allocation6 + $0x48] sm:$0xff] }
 0x262   :  { %v685_v3 = vmax.f32 %v3307_v61, 0.0  ;;  %v1990_v8 = vpop.f32.mrb[2].mxu1  ;;  %v854_v61 = vld [vmem:[#allocation6 + $0x40] sm:$0xff] }
 0x263   :  { %v3312_v13 = vadd.f32 %v1990_v8, %v3301_v53  ;;  %v593_v16 = vpop.f32.mrb[3].mxu1 }
 0x264   :  { %v2413_v20 = vpack.c.bf16 %v686_v62, %v685_v3  ;;  %v3319_v1 = vadd.f32 %v3301_v53, %v593_v16 }
 0x265   :  { %v688_v22 = vmax.f32 %v3312_v13, 0.0  ;;  %v857_v13 = vld [vmem:[#allocation6 + $0x58] sm:$0xff] }
 0x266   :  { %v687_v24 = vmax.f32 %v3319_v1, 0.0  ;;  %v1993_v4 = vpop.f32.mrb[4].mxu1  ;;  %2414 = vmatprep.subr.bf16.mxu0 %v2413_v20 }
 0x267   :  { %v3324_v28 = vadd.f32 %v1993_v4, %v3301_v53  ;;  %v603_v30 = vpop.f32.mrb[5].mxu1  ;;  %2416 = vmatpush3.bf16.msra.mxu0 %v2413_v20 }
 0x268   :  { %v2417_v7 = vpack.c.bf16 %v688_v22, %v687_v24  ;;  %v3331_v33 = vadd.f32 %v3301_v53, %v603_v30 }
 0x269   :  { %v690_v35 = vmax.f32 %v3324_v28, 0.0 }
 0x26a   :  { %v689_v36 = vmax.f32 %v3331_v33, 0.0  ;;  %v1996_v11 = vpop.f32.mrb[6].mxu1  ;;  %2418 = vmatprep.subr.bf16.mxu0 %v2417_v7  ;;  %v860_v33 = vld [vmem:[#allocation6 + $0x70] sm:$0xff] }
 0x26b   :  { %v3336_v18 = vadd.f32 %v1996_v11, %v3301_v53  ;;  %v613_v39 = vpop.f32.mrb[7].mxu1  ;;  %2420 = vmatpush3.bf16.msra.mxu0 %v2417_v7 }
 0x26c   :  { %v2421_v19 = vpack.c.bf16 %v690_v35, %v689_v36  ;;  %v3343_v25 = vadd.f32 %v3301_v53, %v613_v39 }
 0x26d   :  { %v692_v40 = vmax.f32 %v3336_v18, 0.0 }
 0x26e   :  { %v691_v26 = vmax.f32 %v3343_v25, 0.0  ;;  %v1999_v12 = vpop.f32.mrb[8].mxu1  ;;  %2422 = vmatprep.subr.bf16.mxu0 %v2421_v19 }
 0x26f   :  { %v3348_v31 = vadd.f32 %v1999_v12, %v3301_v53  ;;  %v623_v41 = vpop.f32.mrb[9].mxu1  ;;  %2424 = vmatpush3.bf16.msra.mxu0 %v2421_v19 }
 0x270   :  { %v2425_v32 = vpack.c.bf16 %v692_v40, %v691_v26  ;;  %v3355_v42 = vadd.f32 %v3301_v53, %v623_v41 }
 0x271   :  { %v694_v37 = vmax.f32 %v3348_v31, 0.0 }
 0x272   :  { %v693_v43 = vmax.f32 %v3355_v42, 0.0  ;;  %v2002_v38 = vpop.f32.mrb[10].mxu1  ;;  %2426 = vmatprep.subr.bf16.mxu0 %v2425_v32 }
 0x273   :  { %v3360_v44 = vadd.f32 %v2002_v38, %v3301_v53  ;;  %v633_v45 = vpop.f32.mrb[11].mxu1  ;;  %2428 = vmatpush3.bf16.msra.mxu0 %v2425_v32  ;;  %v862_v38 = vld [vmem:[#allocation7] sm:$0xff] }
 0x274   :  { %v2429_v47 = vpack.c.bf16 %v694_v37, %v693_v43  ;;  %v3367_v49 = vadd.f32 %v3301_v53, %v633_v45  ;;  %v863_v45 = vld [vmem:[#allocation7 + $0x8] sm:$0xff] }
 0x275   :  { %v696_v50 = vmax.f32 %v3360_v44, 0.0 }
 0x276   :  { %v695_v55 = vmax.f32 %v3367_v49, 0.0  ;;  %v2005_v59 = vpop.f32.mrb[12].mxu1  ;;  %2430 = vmatprep.subr.bf16.mxu0 %v2429_v47 }
 0x277   :  { %v3372_v8 = vadd.f32 %v2005_v59, %v3301_v53  ;;  %v643_v16 = vpop.f32.mrb[13].mxu1  ;;  %2432 = vmatpush3.bf16.msra.mxu0 %v2429_v47 }
 0x278   :  { %v2433_v20 = vpack.c.bf16 %v696_v50, %v695_v55  ;;  %v3379_v4 = vadd.f32 %v3301_v53, %v643_v16  ;;  %v2445_v16 = vpack.c.bf16 %v863_v45, %v862_v38  ;;  %v870_v45 = vld [vmem:[#allocation7 + $0x40] sm:$0xff] }
 0x279   :  { %v3546_v30 = vmax.f32 %v3372_v8, 0.0  ;;  %v3550_v25 = vmax.f32 %v3372_v8, 0.0 }
 0x27a   :  { %v3547_v7 = vmax.f32 %v3379_v4, 0.0  ;;  %v2008_v11 = vpop.f32.mrb[14].mxu1  ;;  %2434 = vmatprep.subr.bf16.mxu0 %v2433_v20 }
 0x27b   :  { %v3384_v39 = vadd.f32 %v2008_v11, %v3301_v53  ;;  %v653_v19 = vpop.f32.mrb[15].mxu1  ;;  %2436 = vmatpush3.bf16.msra.mxu0 %v2433_v20  ;;  %v864_v20 = vld [vmem:[#allocation7 + $0x10] sm:$0xff]  ;;  %v865_v11 = vld [vmem:[#allocation7 + $0x18] sm:$0xff] }
 0x27c   :  { %v2437_v12 = vpack.c.bf16 %v3546_v30, %v3547_v7  ;;  %v3391_v41 = vadd.f32 %v3301_v53, %v653_v19  ;;  %v2449_v53 = vpack.c.bf16 %v865_v11, %v864_v20  ;;  %v866_v19 = vld [vmem:[#allocation7 + $0x20] sm:$0xff]  ;;  %v867_v30 = vld [vmem:[#allocation7 + $0x28] sm:$0xff]  ;;  %v868_v7 = vld [vmem:[#allocation7 + $0x30] sm:$0xff] }
 0x27d   :  { %v3548_v32 = vmax.f32 %v3384_v39, 0.0 }
 0x27e   :  { %v699_v47 = vmax.f32 %v3391_v41, 0.0  ;;  %2438 = vmatprep.subr.bf16.mxu0 %v2437_v12 }
 0x27f   :  { %2440 = vmatpush3.bf16.msra.mxu0 %v2437_v12  ;;  %v2453_v12 = vpack.c.bf16 %v867_v30, %v866_v19 }
 0x280   :  { %v2441_v59 = vpack.c.bf16 %v3548_v32, %v699_v47  ;;  %v869_v32 = vld [vmem:[#allocation7 + $0x38] sm:$0xff] }
 0x281   :  { %v2457_v38 = vpack.c.bf16 %v869_v32, %v868_v7 }
 0x282   :  { %2442 = vmatprep.subr.bf16.mxu0 %v2441_v59 }
 0x283   :  { %2444 = vmatpush3.bf16.msra.mxu0 %v2441_v59  ;;  %v2852_v59 = vmov 0.0  }
 0x284   :  { %2446 = vmatprep.subr.bf16.mxu0 %v2445_v16  ;;  %2209 = vmatprep.mubr.msk.f32.mxu1 %vm2851_vm0, %v2852_v59 }
 0x286   :  { %2042 = vmatmul.mubr.f32.vlgmr.msra.gmra.mrb[16].mxu0 %v1545_v48  ;;  %v2461_v48 = vpack.c.bf16 %v871_v9, %v870_v45 }
 0x287   :  { %2448 = vmatpush3.bf16.msra.mxu0 %v2445_v16  ;;  %2044 = vmatprep.mubr.f32.mxu0 %v1548_v51  ;;  %v872_v51 = vld [vmem:[#allocation7 + $0x50] sm:$0xff]  ;;  %v3467_v16 = vld [vmem:[#allocation9] ss:$0 sm:$0xff] }
 0x288   :  { %2450 = vmatprep.subr.bf16.mxu0 %v2449_v53 }
 0x28a   :  { %2045 = vmatmul.mubr.f32.gmra.mrb[18].mxu0 %v1549_v54  ;;  %v2465_v54 = vpack.c.bf16 %v873_v46, %v872_v51 }
 0x28b   :  { %2452 = vmatpush3.bf16.msra.mxu0 %v2449_v53  ;;  %2047 = vmatprep.mubr.f32.mxu0 %v1552_v57  ;;  %v874_v57 = vld [vmem:[#allocation7 + $0x60] sm:$0xff] }
 0x28c   :  { %2454 = vmatprep.subr.bf16.mxu0 %v2453_v12 }
 0x28e   :  { %2048 = vmatmul.mubr.f32.gmra.mrb[20].mxu0 %v1553_v60  ;;  %v2469_v60 = vpack.c.bf16 %v875_v52, %v874_v57 }
 0x28f   :  { %2456 = vmatpush3.bf16.msra.mxu0 %v2453_v12  ;;  %2050 = vmatprep.mubr.f32.mxu0 %v1556_v63  ;;  %v876_v63 = vld [vmem:[#allocation7 + $0x70] sm:$0xff] }
 0x290   :  { %2458 = vmatprep.subr.bf16.mxu0 %v2457_v38 }
 0x292   :  { %2051 = vmatmul.mubr.f32.gmra.mrb[22].mxu0 %v1557_v5  ;;  %v2473_v5 = vpack.c.bf16 %v877_v58, %v876_v63 }
 0x293   :  { %2460 = vmatpush3.bf16.msra.mxu0 %v2457_v38  ;;  %2053 = vmatprep.mubr.f32.mxu0 %v1560_v14  ;;  %v846_v14 = vld [vmem:[#allocation6] sm:$0xff] }
 0x294   :  { %2462 = vmatprep.subr.bf16.mxu0 %v2461_v48 }
 0x296   :  { %2054 = vmatmul.mubr.f32.gmra.mrb[24].mxu0 %v1561_v17  ;;  %v2477_v17 = vpack.c.bf16 %v847_v0, %v846_v14 }
 0x297   :  { %2464 = vmatpush3.bf16.msra.mxu0 %v2461_v48  ;;  %2056 = vmatprep.mubr.f32.mxu0 %v1564_v2  ;;  %v848_v2 = vld [vmem:[#allocation6 + $0x10] sm:$0xff] }
 0x298   :  { %2466 = vmatprep.subr.bf16.mxu0 %v2465_v54 }
 0x29a   :  { %2057 = vmatmul.mubr.f32.gmra.mrb[26].mxu0 %v1565_v23  ;;  %v2481_v23 = vpack.c.bf16 %v849_v15, %v848_v2 }
 0x29b   :  { %2468 = vmatpush3.bf16.msra.mxu0 %v2465_v54  ;;  %2059 = vmatprep.mubr.f32.mxu0 %v1568_v6  ;;  %v850_v6 = vld [vmem:[#allocation6 + $0x20] sm:$0xff] }
 0x29c   :  { %2470 = vmatprep.subr.bf16.mxu0 %v2469_v60 }
 0x29e   :  { %2060 = vmatmul.mubr.f32.gmra.mrb[28].mxu0 %v1569_v29  ;;  %v2485_v29 = vpack.c.bf16 %v851_v21, %v850_v6 }
 0x29f   :  { %2472 = vmatpush3.bf16.msra.mxu0 %v2469_v60  ;;  %2062 = vmatprep.mubr.f32.mxu0 %v1572_v10  ;;  %v852_v10 = vld [vmem:[#allocation6 + $0x30] sm:$0xff] }
 0x2a0   :  { %2474 = vmatprep.subr.bf16.mxu0 %v2473_v5 }
 0x2a2   :  { %2063 = vmatmul.mubr.f32.gmra.mrb[30].mxu0 %v1573_v34  ;;  %v2489_v34 = vpack.c.bf16 %v853_v27, %v852_v10 }
 0x2a3   :  { %2476 = vmatpush3.bf16.msra.mxu0 %v2473_v5  ;;  %2097 = vmatprep.mubr.f32.mxu0 %v685_v3  ;;  %v856_v3 = vld [vmem:[#allocation6 + $0x50] sm:$0xff] }
 0x2a4   :  { %2478 = vmatprep.subr.bf16.mxu0 %v2477_v17  ;;  %v2497_v1 = vpack.c.bf16 %v857_v13, %v856_v3 }
 0x2a6   :  { %2098 = vmatmul.mubr.f32.vlgmr.msra.gmra.mrb[32].mxu0 %v686_v62  ;;  %v2493_v62 = vpack.c.bf16 %v855_v56, %v854_v61 }
 0x2a7   :  { %2100 = vmatprep.mubr.f32.mxu0 %v687_v24  ;;  %2480 = vmatpush3.bf16.msra.mxu0 %v2477_v17  ;;  %v859_v24 = vld [vmem:[#allocation6 + $0x68] sm:$0xff] }
 0x2a8   :  { %2482 = vmatprep.subr.bf16.mxu0 %v2481_v23 }
 0x2aa   :  { %2101 = vmatmul.mubr.f32.gmra.mrb[34].mxu0 %v688_v22  ;;  %v858_v22 = vld [vmem:[#allocation6 + $0x60] sm:$0xff] }
 0x2ab   :  { %2103 = vmatprep.mubr.f32.mxu0 %v689_v36  ;;  %2484 = vmatpush3.bf16.msra.mxu0 %v2481_v23  ;;  %v2501_v28 = vpack.c.bf16 %v859_v24, %v858_v22  ;;  %v3549_v36 = vmax.f32 %v3379_v4, 0.0 }
 0x2ac   :  { %2486 = vmatprep.subr.bf16.mxu0 %v2485_v29 }
 0x2ae   :  { %2104 = vmatmul.mubr.f32.gmra.mrb[36].mxu0 %v690_v35  ;;  %v861_v35 = vld [vmem:[#allocation6 + $0x78] sm:$0xff] }
 0x2af   :  { %2106 = vmatprep.mubr.f32.mxu0 %v691_v26  ;;  %2488 = vmatpush3.bf16.msra.mxu0 %v2485_v29  ;;  %v2505_v18 = vpack.c.bf16 %v861_v35, %v860_v33 }
 0x2b0   :  { %2490 = vmatprep.subr.bf16.mxu0 %v2489_v34 }
 0x2b2   :  { %2107 = vmatmul.mubr.f32.gmra.mrb[38].mxu0 %v692_v40  ;;  %v3551_v40 = vmax.f32 %v3384_v39, 0.0 }
 0x2b3   :  { %2109 = vmatprep.mubr.f32.mxu0 %v693_v43  ;;  %2492 = vmatpush3.bf16.msra.mxu0 %v2489_v34 }
 0x2b4   :  { %2494 = vmatprep.subr.bf16.mxu0 %v2493_v62 }
 0x2b6   :  { %2110 = vmatmul.mubr.f32.gmra.mrb[40].mxu0 %v694_v37 }
 0x2b7   :  { %2112 = vmatprep.mubr.f32.mxu0 %v695_v55  ;;  %2496 = vmatpush3.bf16.msra.mxu0 %v2493_v62 }
 0x2b8   :  { %2498 = vmatprep.subr.bf16.mxu0 %v2497_v1 }
 0x2ba   :  { %2113 = vmatmul.mubr.f32.gmra.mrb[42].mxu0 %v696_v50 }
 0x2bb   :  { %2115 = vmatprep.mubr.f32.mxu0 %v3549_v36  ;;  %2500 = vmatpush3.bf16.msra.mxu0 %v2497_v1 }
 0x2bc   :  { %2502 = vmatprep.subr.bf16.mxu0 %v2501_v28 }
 0x2be   :  { %2116 = vmatmul.mubr.f32.gmra.mrb[44].mxu0 %v3550_v25 }
 0x2bf   :  { %2118 = vmatprep.mubr.f32.mxu0 %v699_v47  ;;  %2504 = vmatpush3.bf16.msra.mxu0 %v2501_v28  ;;  %v2850_v47 = vmov 0.0|0.0  }
 0x2c0   :  { %2506 = vmatprep.subr.bf16.mxu0 %v2505_v18  ;;  %2509 = vmatprep.subr.bf16.mxu1 %v2850_v47 }
 0x2c2   :  { %2119 = vmatmul.mubr.f32.gmra.mrb[46].mxu0 %v3551_v40 }
 0x2c3   :  { %2508 = vmatpush3.bf16.msra.mxu0 %v2505_v18 }
 0x2c4   :  { %2557 = vmatprep.subr.bf16.mxu0 %v2850_v47 }
 0x359   :  { %v2043_v26 = vpop.f32.mrb[16].mxu0 }
 0x35a   :  { %v767_v31 = vpop.f32.mrb[17].mxu0 }
 0x35b   :  { %2153 = vmatprep.mubr.f32.mxu0 %v767_v31 }
 0x35c   :  { %2154 = vmatmul.mubr.f32.vlgmr.msra.gmra.mrb[32].mxu0 %v2043_v26 }
 0x35d   :  { %v2046_v42 = vpop.f32.mrb[18].mxu0 }
 0x35e   :  { %v777_v37 = vpop.f32.mrb[19].mxu0 }
 0x35f   :  { %2156 = vmatprep.mubr.f32.mxu0 %v777_v37 }
 0x360   :  { %2157 = vmatmul.mubr.f32.gmra.mrb[34].mxu0 %v2046_v42 }
 0x361   :  { %v2049_v43 = vpop.f32.mrb[20].mxu0 }
 0x362   :  { %v787_v44 = vpop.f32.mrb[21].mxu0 }
 0x363   :  { %2159 = vmatprep.mubr.f32.mxu0 %v787_v44 }
 0x364   :  { %2160 = vmatmul.mubr.f32.gmra.mrb[36].mxu0 %v2049_v43 }
 0x365   :  { %v2052_v49 = vpop.f32.mrb[22].mxu0 }
 0x366   :  { %v797_v50 = vpop.f32.mrb[23].mxu0 }
 0x367   :  { %2162 = vmatprep.mubr.f32.mxu0 %v797_v50 }
 0x368   :  { %2163 = vmatmul.mubr.f32.gmra.mrb[38].mxu0 %v2052_v49 }
 0x369   :  { %v2055_v55 = vpop.f32.mrb[24].mxu0 }
 0x36a   :  { %v807_v8 = vpop.f32.mrb[25].mxu0 }
 0x36b   :  { %2165 = vmatprep.mubr.f32.mxu0 %v807_v8 }
 0x36c   :  { %2166 = vmatmul.mubr.f32.gmra.mrb[40].mxu0 %v2055_v55 }
 0x36d   :  { %v2058_v4 = vpop.f32.mrb[26].mxu0 }
 0x36e   :  { %v817_v30 = vpop.f32.mrb[27].mxu0 }
 0x36f   :  { %2168 = vmatprep.mubr.f32.mxu0 %v817_v30  ;;  %v1207_v30 = vld [vmem:[%s3543_s11] sm:$0xff] }
 0x370   :  { %2169 = vmatmul.mubr.f32.gmra.mrb[42].mxu0 %v2058_v4 }
 0x371   :  { %v2061_v7 = vpop.f32.mrb[28].mxu0 }
 0x372   :  { %v827_v39 = vpop.f32.mrb[29].mxu0 }
 0x373   :  { %2171 = vmatprep.mubr.f32.mxu0 %v827_v39  ;;  %v1350_v39 = vld [vmem:[#allocation10 + $0x8] sm:$0xff] }
 0x374   :  { %2172 = vmatmul.mubr.f32.gmra.mrb[44].mxu0 %v2061_v7  ;;  %v1349_v7 = vld [vmem:[#allocation10] sm:$0xff] }
 0x375   :  { %v2064_v41 = vpop.f32.mrb[30].mxu0 }
 0x376   :  { %v837_v32 = vpop.f32.mrb[31].mxu0 }
 0x377   :  { %2174 = vmatprep.mubr.f32.mxu0 %v837_v32  ;;  %v2582_v32 = vpack.c.bf16 %v1350_v39, %v1349_v7 }
 0x378   :  { %2175 = vmatmul.mubr.f32.gmra.mrb[46].mxu0 %v2064_v41  ;;  %v1278_v41 = vld [vmem:[%s3544_s12] sm:$0xff] }
 0x379   :  { %2279 = vmatprep.mubr.msk.f32.mxu0 %vm2851_vm0, %v2852_v59 }
 0x42f   :  { %v2155_v20 = vpop.f32.mrb[32].mxu0 }
 0x430   :  { %v1176_v11 = vadd.f32 %v2155_v20, %v3467_v16  ;;  %v1089_v53 = vpop.f32.mrb[33].mxu0  ;;  %v1352_v20 = vld [vmem:[#allocation10 + $0x18] sm:$0xff] }
 0x431   :  { %v1175_v19 = vadd.f32 %v3467_v16, %v1089_v53  ;;  %v1353_v53 = vld [vmem:[#allocation10 + $0x20] sm:$0xff] }
 0x432   :  { %v1192_v12 = vmax.f32 %v1176_v11, 0.0 }
 0x433   :  { %v1191_v38 = vmax.f32 %v1175_v19, 0.0  ;;  %v2158_v45 = vpop.f32.mrb[34].mxu0  ;;  %v1354_v19 = vld [vmem:[#allocation10 + $0x28] sm:$0xff] }
 0x434   :  { %v1178_v9 = vadd.f32 %v2158_v45, %v3467_v16  ;;  %v1099_v48 = vpop.f32.mrb[35].mxu0  ;;  %v1356_v45 = vld [vmem:[#allocation10 + $0x38] sm:$0xff] }
 0x435   :  { %v3472_v51 = vpack.c.bf16 %v1192_v12, %v1191_v38  ;;  %v1177_v46 = vadd.f32 %v3467_v16, %v1099_v48  ;;  %v2588_v12 = vpack.c.bf16 %v1354_v19, %v1353_v53  ;;  %v1355_v38 = vld [vmem:[#allocation10 + $0x30] sm:$0xff]  ;;  %v1357_v48 = vld [vmem:[#allocation10 + $0x40] sm:$0xff] }
 0x436   :  { %v1194_v54 = vmax.f32 %v1178_v9, 0.0  ;;  %v2591_v9 = vpack.c.bf16 %v1356_v45, %v1355_v38 }
 0x437   :  { %v1193_v57 = vmax.f32 %v1177_v46, 0.0  ;;  %v2161_v52 = vpop.f32.mrb[36].mxu0  ;;  %2511 = vmatpush3.bf16.msra.mxu1 %v3472_v51 }
 0x438   :  { %v1180_v60 = vadd.f32 %v2161_v52, %v3467_v16  ;;  %v1109_v63 = vpop.f32.mrb[37].mxu0  ;;  %2512 = vmatprep.subr.bf16.mxu1 %v2850_v47  ;;  %v1361_v52 = vld [vmem:[#allocation10 + $0x60] sm:$0xff] }
 0x439   :  { %v2513_v58 = vpack.c.bf16 %v1194_v54, %v1193_v57  ;;  %v1179_v5 = vadd.f32 %v3467_v16, %v1109_v63  ;;  %v1360_v54 = vld [vmem:[#allocation10 + $0x58] sm:$0xff] }
 0x43a   :  { %v1196_v14 = vmax.f32 %v1180_v60, 0.0  ;;  %v1362_v60 = vld [vmem:[#allocation10 + $0x68] sm:$0xff] }
 0x43b   :  { %v1195_v0 = vmax.f32 %v1179_v5, 0.0  ;;  %v2164_v17 = vpop.f32.mrb[38].mxu0  ;;  %2514 = vmatpush3.bf16.msra.mxu1 %v2513_v58  ;;  %v2600_v63 = vpack.c.bf16 %v1362_v60, %v1361_v52  ;;  %v1364_v5 = vld [vmem:[#allocation10 + $0x78] sm:$0xff] }
 0x43c   :  { %v1182_v2 = vadd.f32 %v2164_v17, %v3467_v16  ;;  %v1119_v15 = vpop.f32.mrb[39].mxu0  ;;  %2515 = vmatprep.subr.bf16.mxu1 %v2850_v47  ;;  %v1366_v17 = vld [vmem:[#allocation12 + $0x8] sm:$0xff] }
 0x43d   :  { %v2516_v23 = vpack.c.bf16 %v1196_v14, %v1195_v0  ;;  %v1181_v6 = vadd.f32 %v3467_v16, %v1119_v15  ;;  %v1365_v0 = vld [vmem:[#allocation12] sm:$0xff]  ;;  %v1367_v15 = vld [vmem:[#allocation12 + $0x10] sm:$0xff] }
 0x43e   :  { %v1198_v21 = vmax.f32 %v1182_v2, 0.0  ;;  %v2558_v2 = vpack.c.bf16 %v1366_v17, %v1365_v0 }
 0x43f   :  { %v1197_v29 = vmax.f32 %v1181_v6, 0.0  ;;  %v2167_v10 = vpop.f32.mrb[40].mxu0  ;;  %2517 = vmatpush3.bf16.msra.mxu1 %v2516_v23 }
 0x440   :  { %v1184_v27 = vadd.f32 %v2167_v10, %v3467_v16  ;;  %v1129_v34 = vpop.f32.mrb[41].mxu0  ;;  %2518 = vmatprep.subr.bf16.mxu1 %v2850_v47  ;;  %2559 = vmatpush3.bf16.msra.mxu0 %v2558_v2 }
 0x441   :  { %v2519_v61 = vpack.c.bf16 %v1198_v21, %v1197_v29  ;;  %v1183_v56 = vadd.f32 %v3467_v16, %v1129_v34  ;;  %2560 = vmatprep.subr.bf16.mxu0 %v2850_v47  ;;  %v1369_v21 = vld [vmem:[#allocation12 + $0x20] sm:$0xff]  ;;  %v1370_v29 = vld [vmem:[#allocation12 + $0x28] sm:$0xff]  ;;  %v1372_v34 = vld [vmem:[#allocation12 + $0x38] sm:$0xff] }
 0x442   :  { %v1200_v62 = vmax.f32 %v1184_v27, 0.0  ;;  %v2564_v10 = vpack.c.bf16 %v1370_v29, %v1369_v21  ;;  %v1371_v27 = vld [vmem:[#allocation12 + $0x30] sm:$0xff] }
 0x443   :  { %v1199_v3 = vmax.f32 %v1183_v56, 0.0  ;;  %v2170_v13 = vpop.f32.mrb[42].mxu0  ;;  %2520 = vmatpush3.bf16.msra.mxu1 %v2519_v61  ;;  %v1373_v56 = vld [vmem:[#allocation12 + $0x40] sm:$0xff] }
 0x444   :  { %v1186_v1 = vadd.f32 %v2170_v13, %v3467_v16  ;;  %v1139_v22 = vpop.f32.mrb[43].mxu0  ;;  %2521 = vmatprep.subr.bf16.mxu1 %v2850_v47  ;;  %v1375_v13 = vld [vmem:[#allocation12 + $0x50] sm:$0xff] }
 0x445   :  { %v2522_v24 = vpack.c.bf16 %v1200_v62, %v1199_v3  ;;  %v1185_v28 = vadd.f32 %v3467_v16, %v1139_v22  ;;  %v1374_v62 = vld [vmem:[#allocation12 + $0x48] sm:$0xff] }
 0x446   :  { %v1202_v33 = vmax.f32 %v1186_v1, 0.0  ;;  %v2570_v3 = vpack.c.bf16 %v1374_v62, %v1373_v56  ;;  %v1376_v1 = vld [vmem:[#allocation12 + $0x58] sm:$0xff] }
 0x447   :  { %v1201_v35 = vmax.f32 %v1185_v28, 0.0  ;;  %v2173_v36 = vpop.f32.mrb[44].mxu0  ;;  %2523 = vmatpush3.bf16.msra.mxu1 %v2522_v24  ;;  %v2573_v22 = vpack.c.bf16 %v1376_v1, %v1375_v13  ;;  %v1378_v28 = vld [vmem:[#allocation12 + $0x68] sm:$0xff] }
 0x448   :  { %v1188_v18 = vadd.f32 %v2173_v36, %v3467_v16  ;;  %v1149_v25 = vpop.f32.mrb[45].mxu0  ;;  %2524 = vmatprep.subr.bf16.mxu1 %v2850_v47  ;;  %v1380_v36 = vld [vmem:[#allocation12 + $0x78] sm:$0xff] }
 0x449   :  { %v2525_v40 = vpack.c.bf16 %v1202_v33, %v1201_v35  ;;  %v1187_v26 = vadd.f32 %v3467_v16, %v1149_v25  ;;  %v1379_v35 = vld [vmem:[#allocation12 + $0x70] sm:$0xff] }
 0x44a   :  { %v1204_v31 = vmax.f32 %v1188_v18, 0.0  ;;  %v2579_v18 = vpack.c.bf16 %v1380_v36, %v1379_v35 }
 0x44b   :  { %v1203_v42 = vmax.f32 %v1187_v26, 0.0  ;;  %v2176_v37 = vpop.f32.mrb[46].mxu0  ;;  %2526 = vmatpush3.bf16.msra.mxu1 %v2525_v40 }
 0x44c   :  { %v1190_v43 = vadd.f32 %v2176_v37, %v3467_v16  ;;  %v1159_v44 = vpop.f32.mrb[47].mxu0  ;;  %2527 = vmatprep.subr.bf16.mxu1 %v2850_v47 }
 0x44d   :  { %v2528_v49 = vpack.c.bf16 %v1204_v31, %v1203_v42  ;;  %v1189_v50 = vadd.f32 %v3467_v16, %v1159_v44  ;;  %v1351_v16 = vld [vmem:[#allocation10 + $0x10] sm:$0xff]  ;;  %v1541_v44 = vld [vmem:[#allocation13] ss:$0 sm:$0xff] }
 0x44e   :  { %v1206_v55 = vmax.f32 %v1190_v43, 0.0  ;;  %v2585_v11 = vpack.c.bf16 %v1352_v20, %v1351_v16 }
 0x44f   :  { %v1205_v8 = vmax.f32 %v1189_v50, 0.0  ;;  %2529 = vmatpush3.bf16.msra.mxu1 %v2528_v49 }
 0x450   :  { %2530 = vmatprep.subr.bf16.mxu1 %v2850_v47 }
 0x451   :  { %v2531_v4 = vpack.c.bf16 %v1206_v55, %v1205_v8 }
 0x453   :  { %2532 = vmatpush3.bf16.msra.mxu1 %v2531_v4 }
 0x454   :  { %2533 = vmatprep.subr.bf16.mxu1 %v2850_v47 }
 0x456   :  { %2210 = vmatmul.mubr.f32.vlgmr.msra.gmra.mrb[16].mxu1 %v1207_v30 }
 0x457   :  { %2535 = vmatpush3.bf16.msra.mxu1 %v3472_v51  ;;  %2244 = vmatprep.mubr.msk.f32.mxu1 %vm2851_vm0, %v2852_v59  ;;  %v1358_v51 = vld [vmem:[#allocation10 + $0x48] sm:$0xff] }
 0x458   :  { %2536 = vmatprep.subr.bf16.mxu1 %v2850_v47  ;;  %v2594_v46 = vpack.c.bf16 %v1358_v51, %v1357_v48 }
 0x45b   :  { %2538 = vmatpush3.bf16.msra.mxu1 %v2513_v58  ;;  %v1363_v58 = vld [vmem:[#allocation10 + $0x70] sm:$0xff] }
 0x45c   :  { %2539 = vmatprep.subr.bf16.mxu1 %v2850_v47  ;;  %v2603_v14 = vpack.c.bf16 %v1364_v5, %v1363_v58 }
 0x45f   :  { %2541 = vmatpush3.bf16.msra.mxu1 %v2516_v23  ;;  %v1368_v23 = vld [vmem:[#allocation12 + $0x18] sm:$0xff] }
 0x460   :  { %2542 = vmatprep.subr.bf16.mxu1 %v2850_v47  ;;  %v2561_v6 = vpack.c.bf16 %v1368_v23, %v1367_v15 }
 0x462   :  { %2562 = vmatpush3.bf16.msra.mxu0 %v2561_v6 }
 0x463   :  { %2544 = vmatpush3.bf16.msra.mxu1 %v2519_v61  ;;  %2563 = vmatprep.subr.bf16.mxu0 %v2850_v47  ;;  %v2567_v61 = vpack.c.bf16 %v1372_v34, %v1371_v27 }
 0x464   :  { %2545 = vmatprep.subr.bf16.mxu1 %v2850_v47 }
 0x466   :  { %2565 = vmatpush3.bf16.msra.mxu0 %v2564_v10 }
 0x467   :  { %2547 = vmatpush3.bf16.msra.mxu1 %v2522_v24  ;;  %2566 = vmatprep.subr.bf16.mxu0 %v2850_v47  ;;  %v1377_v24 = vld [vmem:[#allocation12 + $0x60] sm:$0xff] }
 0x468   :  { %2548 = vmatprep.subr.bf16.mxu1 %v2850_v47  ;;  %v2576_v33 = vpack.c.bf16 %v1378_v28, %v1377_v24 }
 0x46a   :  { %2568 = vmatpush3.bf16.msra.mxu0 %v2567_v61 }
 0x46b   :  { %2550 = vmatpush3.bf16.msra.mxu1 %v2525_v40  ;;  %2569 = vmatprep.subr.bf16.mxu0 %v2850_v47 }
 0x46c   :  { %2551 = vmatprep.subr.bf16.mxu1 %v2850_v47 }
 0x46e   :  { %2571 = vmatpush3.bf16.msra.mxu0 %v2570_v3 }
 0x46f   :  { %2553 = vmatpush3.bf16.msra.mxu1 %v2528_v49  ;;  %2572 = vmatprep.subr.bf16.mxu0 %v2850_v47 }
 0x470   :  { %2554 = vmatprep.subr.bf16.mxu1 %v2850_v47 }
 0x472   :  { %2574 = vmatpush3.bf16.msra.mxu0 %v2573_v22 }
 0x473   :  { %2556 = vmatpush3.bf16.msra.mxu1 %v2531_v4  ;;  %2575 = vmatprep.subr.bf16.mxu0 %v2850_v47 }
 0x474   :  { %2581 = vmatprep.subr.bf16.mxu1 %v2850_v47 }
 0x476   :  { %2245 = vmatmul.mubr.f32.vlgmr.msra.gmra.mrb[18].mxu1 %v1278_v41  ;;  %2577 = vmatpush3.bf16.msra.mxu0 %v2576_v33 }
 0x477   :  { %2583 = vmatpush3.bf16.msra.mxu1 %v2582_v32  ;;  %2314 = vmatprep.mubr.msk.f32.mxu1 %vm2851_vm0, %v2852_v59  ;;  %v1359_v59 = vld [vmem:[#allocation10 + $0x50] sm:$0xff] }
 0x478   :  { %2584 = vmatprep.subr.bf16.mxu1 %v2850_v47  ;;  %v2597_v57 = vpack.c.bf16 %v1360_v54, %v1359_v59  ;;  %2578 = vmatprep.subr.bf16.mxu0 %v2850_v47 }
 0x47a   :  { %2580 = vmatpush3.bf16.msra.mxu0 %v2579_v18 }
 0x47b   :  { %2586 = vmatpush3.bf16.msra.mxu1 %v2585_v11 }
 0x47c   :  { %2587 = vmatprep.subr.bf16.mxu1 %v2850_v47 }
 0x47f   :  { %2589 = vmatpush3.bf16.msra.mxu1 %v2588_v12 }
 0x480   :  { %2590 = vmatprep.subr.bf16.mxu1 %v2850_v47 }
 0x483   :  { %2592 = vmatpush3.bf16.msra.mxu1 %v2591_v9 }
 0x484   :  { %2593 = vmatprep.subr.bf16.mxu1 %v2850_v47 }
 0x487   :  { %2595 = vmatpush3.bf16.msra.mxu1 %v2594_v46 }
 0x488   :  { %2596 = vmatprep.subr.bf16.mxu1 %v2850_v47 }
 0x48b   :  { %2598 = vmatpush3.bf16.msra.mxu1 %v2597_v57 }
 0x48c   :  { %2599 = vmatprep.subr.bf16.mxu1 %v2850_v47 }
 0x48f   :  { %2601 = vmatpush3.bf16.msra.mxu1 %v2600_v63 }
 0x490   :  { %2602 = vmatprep.subr.bf16.mxu1 %v2850_v47 }
 0x493   :  { %2604 = vmatpush3.bf16.msra.mxu1 %v2603_v14 }
 0x529   :  { %v1274_v25 = vpop.f32.mrb[16].mxu1 }
 0x52a   :  { %v2211_v40 = vpop.f32.mrb[17].mxu1  ;;  %2315 = vmatmul.mubr.f32.vlgmr.msra.gmra.mrb[20].mxu1 %v1274_v25 }
 0x549   :  { %v1345_v26 = vpop.f32.mrb[18].mxu1 }
 0x54a   :  { %v2246_v31 = vpop.f32.mrb[19].mxu1  ;;  %2280 = vmatmul.mubr.f32.vlgmr.msra.gmra.mrb[48].mxu0 %v1345_v26 }
 0x5fd   :  { %v1517_v42 = vpop.f32.mrb[20].mxu1 }
 0x5fe   :  { %v2316_v37 = vpop.f32.mrb[21].mxu1 }
 0x61d   :  { %v1447_v43 = vpop.f32.mrb[48].mxu0 }
 0x61e   :  { %v1518_v49 = vadd.f32 %v1517_v42, %v1447_v43  ;;  %v2281_v50 = vpop.f32.mrb[49].mxu0 }
 0x620   :  { %v1528_v55 = vadd.f32 %v1541_v44, %v1518_v49 }
 0x622   :  { %1529 = vst [vmem:[%s3545_s13] sm:$0xff] %v1528_v55 }
 0x623   :  { %1534 = vsyncpa [#allocation3], 1 }
 0x624   :  { %1535 = vsyncpa [#allocation5], 1 }
 0x625   :  { %1536 = vsyncpa [#allocation8], 1 }
 0x626   :  { %1537 = vsyncpa [#allocation11], 1 }
 0x627   :  { %1538 = vsyncpa [#allocation14], 1 }

</bundles_post_ra>
